<compile_context>
chip_gen: v7x
topology: tpu7x:2x2x1
jax: 0.10.0
libtpu: 0.0.40
codegen_flags: <defaults>
</compile_context>

<pallas_src>
import functools

import jax
import jax.numpy as jnp
from jax.experimental import pallas as pl
from jax.experimental.pallas import tpu as pltpu

_DOT_DTYPE = jnp.bfloat16


def _round_up(n, m):
    return ((n + m - 1) // m) * m


def _pad2(a, rows, cols):
    return jnp.pad(a, ((0, rows - a.shape[0]), (0, cols - a.shape[1])))


# ----------------------------------------------------------------------------
# Kernel 1: deterministic branch  out = (x * exp(-alpha_interp)) @ W + b
# ----------------------------------------------------------------------------
def _nbs_det_kernel(x_ref, a_ref, w_ref, b_ref, o_ref):
    k = pl.program_id(1)

    @pl.when(k == 0)
    def _init():
        # Initialize the resident output block with the bias.
        o_ref[...] = jnp.broadcast_to(b_ref[...], o_ref.shape).astype(o_ref.dtype)

    # mask/exp math in f32, narrow only the dot inputs to bf16 (f32 accumulate).
    xw = (x_ref[...] * jnp.exp(-a_ref[...])).astype(_DOT_DTYPE)
    o_ref[...] += jnp.dot(
        xw, w_ref[...].astype(_DOT_DTYPE), preferred_element_type=jnp.float32
    )


def nbs_cls_det(x, alpha_interp, weight, bias):
    """x: [B, F], alpha_interp: [B, F], weight: [F, C], bias: [1, C] -> [B, C]."""
    B, F = x.shape
    C = weight.shape[1]

    # Tile batch (parallel) and features (reduction); class dim stays untiled
    # (small after 128-padding). Tiles are small enough for the default scoped
    # VMEM limit on all of v5e/v6e/v7x.
    tm = 256 if B > 256 else _round_up(B, 8)
    tk = 512 if F > 512 else _round_up(F, 128)
    Bp = _round_up(B, tm)
    Fp = _round_up(F, tk)
    Cp = _round_up(C, 128)   # lane-dense output stores

    xp = _pad2(x.astype(jnp.float32), Bp, Fp)
    ap = _pad2(alpha_interp.astype(jnp.float32), Bp, Fp)
    wp = _pad2(weight.astype(jnp.float32), Fp, Cp)
    bp = _pad2(bias.astype(jnp.float32).reshape(1, -1), 1, Cp)

    out = pl.pallas_call(
        _nbs_det_kernel,
        out_shape=jax.ShapeDtypeStruct((Bp, Cp), jnp.float32),
        grid=(Bp // tm, Fp // tk),
        in_specs=[
            pl.BlockSpec((tm, tk), lambda i, k: (i, k)),
            pl.BlockSpec((tm, tk), lambda i, k: (i, k)),
            pl.BlockSpec((tk, Cp), lambda i, k: (k, 0)),
            pl.BlockSpec((1, Cp), lambda i, k: (0, 0)),
        ],
        out_specs=pl.BlockSpec((tm, Cp), lambda i, k: (i, 0)),
        compiler_params=pltpu.CompilerParams(
            dimension_semantics=("parallel", "arbitrary")
        ),
    )(xp, ap, wp, bp)
    return out[:B, :C]


# ----------------------------------------------------------------------------
# Kernel 2: Monte-Carlo branch  out[i] = (x * U[0,1)) @ W + b ,  i = 0..alpha-1
# S samples are batched per grid step into one (S*Bp, Fp) @ (Fp, Cp) matmul.
# ----------------------------------------------------------------------------
def _nbs_mc_kernel(x_ref, mask_ref, w_ref, b_ref, o_ref, *, n_rep):
    # x_ref: (Bp, Fp); mask_ref: (S*Bp, Fp); w_ref: (Fp, Cp); b_ref: (1, Cp)
    # o_ref: (S*Bp, Cp)
    x = x_ref[...]
    if n_rep > 1:
        # Tile x across the S samples (sublane-aligned concat, Bp % 8 == 0).
        x = jnp.concatenate([x] * n_rep, axis=0)
    xm = (mask_ref[...] * x).astype(_DOT_DTYPE)
    acc = jnp.dot(
        xm, w_ref[...].astype(_DOT_DTYPE), preferred_element_type=jnp.float32
    )
    o_ref[...] = acc + b_ref[...]


def nbs_cls_mc(x, weight, bias, alpha, key):
    """x: [B, F], weight: [F, C], bias: [1, C], alpha: int -> [alpha, B, C]."""
    B, F = x.shape
    C = weight.shape[1]
    Bp = _round_up(B, 8)
    Fp = _round_up(F, 128)
    Cp = _round_up(C, 128)

    # Batch S samples per grid step so each matmul feeds >= ~256 MXU rows.
    S = max(1, min(alpha, max(1, 256 // Bp)))
    alpha_p = _round_up(alpha, S)
    TS = S * Bp

    xp = _pad2(x.astype(jnp.float32), Bp, Fp)
    wp = _pad2(weight.astype(jnp.float32), Fp, Cp)
    bp = _pad2(bias.astype(jnp.float32).reshape(1, -1), 1, Cp)

    # Uniform-[0,1) masks, one per (sample, batch row), drawn host-side.
    # TODO(synk): in-kernel pltpu.prng_* has no CPU/interpret lowering; masks are
    # generated with jax.random (same distribution, different bits than torch.rand).
    mask = jax.random.uniform(key, (alpha_p * Bp, Fp), jnp.float32)

    out = pl.pallas_call(
        functools.partial(_nbs_mc_kernel, n_rep=S),
        out_shape=jax.ShapeDtypeStruct((alpha_p * Bp, Cp), jnp.float32),
        grid=(alpha_p // S,),
        in_specs=[
            pl.BlockSpec((Bp, Fp), lambda i: (0, 0)),
            pl.BlockSpec((TS, Fp), lambda i: (i, 0)),
            pl.BlockSpec((Fp, Cp), lambda i: (0, 0)),
            pl.BlockSpec((1, Cp), lambda i: (0, 0)),
        ],
        out_specs=pl.BlockSpec((TS, Cp), lambda i: (i, 0)),
        compiler_params=pltpu.CompilerParams(
            dimension_semantics=("parallel",)   # samples independent -> shard across TCs
        ),
    )(xp, mask, wp, bp)
    return out.reshape(alpha_p, Bp, Cp)[:alpha, :B, :C]


# ----------------------------------------------------------------------------
# Glue: parameter init + nearest interpolation (matches F.interpolate nearest)
# ----------------------------------------------------------------------------
def init_params(key, in_feat, num_classes):
    kw, kb = jax.random.split(key)
    bound = 1.0 / jnp.sqrt(jnp.float32(in_feat))
    # torch.nn.Linear stores weight as [C, F]; we keep the transposed [F, C].
    weight = jax.random.uniform(
        kw, (in_feat, num_classes), jnp.float32, -bound, bound
    )
    bias = jax.random.uniform(kb, (1, num_classes), jnp.float32, -bound, bound)
    return weight, bias


def nearest_interp_1d(alpha, out_size):
    """alpha: [B, L] -> [B, out_size] with PyTorch 'nearest' semantics."""
    L = alpha.shape[1]
    idx = (jnp.arange(out_size) * L) // out_size  # floor(out_idx * L / out_size)
    return alpha[:, idx]


def nbs_cls_forward(x, alpha, weight, bias, in_feat, *, key=None):
    if isinstance(alpha, int):
        if key is None:
            key = jax.random.PRNGKey(0)
        return nbs_cls_mc(x, weight, bias, alpha, key)
    alpha_interp = nearest_interp_1d(alpha, in_feat).astype(jnp.float32)
    return nbs_cls_det(x, alpha_interp, weight, bias)


# ----------------------------------------------------------------------------
if __name__ == "__main__":
    B, IN_FEAT, NUM_CLASSES, L = 4, 32, 16, 8
    key = jax.random.PRNGKey(0)
    kx, ka, kp, km = jax.random.split(key, 4)

    x = jax.random.normal(kx, (B, IN_FEAT), jnp.float32)
    alpha_t = jax.random.uniform(ka, (B, L), jnp.float32)
    weight, bias = init_params(kp, IN_FEAT, NUM_CLASSES)

    # --- tensor-alpha (deterministic) branch ---
    out_det = nbs_cls_forward(x, alpha_t, weight, bias, IN_FEAT)
    out_det = jax.block_until_ready(out_det)
    assert out_det.shape == (B, NUM_CLASSES)
    # Reference with the same bf16 rounding of the dot inputs (f32 accumulate).
    xs = x * jnp.exp(-nearest_interp_1d(alpha_t, IN_FEAT))
    ref = (
        jnp.dot(
            xs.astype(_DOT_DTYPE).astype(jnp.float32),
            weight.astype(_DOT_DTYPE).astype(jnp.float32),
            precision=jax.lax.Precision.HIGHEST,
        )
        + bias
    )
    assert jnp.allclose(out_det, ref, atol=1e-3, rtol=1e-3), float(
        jnp.max(jnp.abs(out_det - ref))
    )

    # --- int-alpha (Monte-Carlo) branch ---
    ALPHA = 3
    out_mc = nbs_cls_forward(x, ALPHA, weight, bias, IN_FEAT, key=km)
    out_mc = jax.block_until_ready(out_mc)
    assert out_mc.shape == (ALPHA, B, NUM_CLASSES)
    assert bool(jnp.all(jnp.isfinite(out_mc)))

    print("KERNEL_OK")
</pallas_src>

<mosaic_0001>
module attributes {stable_mosaic.version = 11 : i64} {
  func.func @_nbs_det_kernel(%arg0: i32, %arg1: i32, %arg2: memref<8x128xf32, #tpu.memory_space<vmem>>, %arg3: memref<8x128xf32, #tpu.memory_space<vmem>>, %arg4: memref<128x128xf32, #tpu.memory_space<vmem>>, %arg5: memref<1x128xf32, #tpu.memory_space<vmem>>, %arg6: memref<8x128xf32, #tpu.memory_space<vmem>>) attributes {dimension_semantics = [#tpu.dimension_semantics<parallel>, #tpu.dimension_semantics<arbitrary>], iteration_bounds = array<i64: 1, 1>, scalar_prefetch = 0 : i64, scratch_operands = 0 : i64, tpu.core_type = #tpu.core_type<tc>, window_params = [{transform_indices = @transform_0, window_bounds = array<i64: 8, 128>}, {transform_indices = @transform_1, window_bounds = array<i64: 8, 128>}, {transform_indices = @transform_2, window_bounds = array<i64: 128, 128>}, {pipeline_mode = #tpu.pipeline_mode<synchronous>, transform_indices = @transform_3, window_bounds = array<i64: 1, 128>}, {transform_indices = @transform_4, window_bounds = array<i64: 8, 128>}]} {
    %c0_i32 = arith.constant 0 : i32
    %0 = arith.cmpi eq, %arg1, %c0_i32 : i32
    %1 = arith.extui %0 : i1 to i32
    %c0_i32_0 = arith.constant 0 : i32
    %2 = arith.cmpi ne, %1, %c0_i32_0 : i32
    scf.if %2 {
      %c0_11 = arith.constant 0 : index
      %c0_12 = arith.constant 0 : index
      %16 = vector.load %arg5[%c0_11, %c0_12] : memref<1x128xf32, #tpu.memory_space<vmem>>, vector<1x128xf32>
      %17 = vector.shape_cast %16 : vector<1x128xf32> to vector<1x128xf32>
      %18 = vector.broadcast %17 : vector<1x128xf32> to vector<8x128xf32>
      %c0_13 = arith.constant 0 : index
      %c0_14 = arith.constant 0 : index
      %19 = vector.load %arg6[%c0_13, %c0_14] : memref<8x128xf32, #tpu.memory_space<vmem>>, vector<8x128xf32>
      tpu.vector_store %arg6[%c0_13, %c0_14], %18 {strides = array<i32>} : memref<8x128xf32, #tpu.memory_space<vmem>>, vector<8x128xf32>,
    } else {
    }
    %c0 = arith.constant 0 : index
    %c0_1 = arith.constant 0 : index
    %3 = vector.load %arg2[%c0, %c0_1] : memref<8x128xf32, #tpu.memory_space<vmem>>, vector<8x128xf32>
    %c0_2 = arith.constant 0 : index
    %c0_3 = arith.constant 0 : index
    %4 = vector.load %arg3[%c0_2, %c0_3] : memref<8x128xf32, #tpu.memory_space<vmem>>, vector<8x128xf32>
    %cst = arith.constant 0.000000e+00 : f32
    %5 = vector.broadcast %cst : f32 to vector<8x128xf32>
    %6 = arith.subf %5, %4 : vector<8x128xf32>
    %7 = math.exp %6 : vector<8x128xf32>
    %8 = arith.mulf %3, %7 : vector<8x128xf32>
    %9 = arith.truncf %8 : vector<8x128xf32> to vector<8x128xbf16>
    %c0_4 = arith.constant 0 : index
    %c0_5 = arith.constant 0 : index
    %10 = vector.load %arg6[%c0_4, %c0_5] : memref<8x128xf32, #tpu.memory_space<vmem>>, vector<8x128xf32>
    %c0_6 = arith.constant 0 : index
    %c0_7 = arith.constant 0 : index
    %11 = vector.load %arg4[%c0_6, %c0_7] : memref<128x128xf32, #tpu.memory_space<vmem>>, vector<128x128xf32>
    %12 = arith.truncf %11 : vector<128x128xf32> to vector<128x128xbf16>
    %cst_8 = arith.constant dense<0.000000e+00> : vector<8x128xf32>
    %13 = tpu.matmul %9, %12, %cst_8 {dimension_numbers = #tpu.dot_dimension_numbers<[1], [0], [0], [1], [0, 0, 1, 1], [], []>} : vector<8x128xbf16>, vector<128x128xbf16>, vector<8x128xf32> -> vector<8x128xf32>
    %14 = arith.addf %10, %13 : vector<8x128xf32>
    %c0_9 = arith.constant 0 : index
    %c0_10 = arith.constant 0 : index
    %15 = vector.load %arg6[%c0_9, %c0_10] : memref<8x128xf32, #tpu.memory_space<vmem>>, vector<8x128xf32>
    tpu.vector_store %arg6[%c0_9, %c0_10], %14 {strides = array<i32>} : memref<8x128xf32, #tpu.memory_space<vmem>>, vector<8x128xf32>,
    return
  }
  func.func @transform_0(%arg0: i32, %arg1: i32) -> (i32, i32) {
    %c0_i32 = arith.constant 0 : i32
    return %arg0, %arg1 : i32, i32
  }
  func.func @transform_1(%arg0: i32, %arg1: i32) -> (i32, i32) {
    %c0_i32 = arith.constant 0 : i32
    return %arg0, %arg1 : i32, i32
  }
  func.func @transform_2(%arg0: i32, %arg1: i32) -> (i32, i32) {
    %c0_i32 = arith.constant 0 : i32
    %c0_i32_0 = arith.constant 0 : i32
    return %arg1, %c0_i32 : i32, i32
  }
  func.func @transform_3(%arg0: i32, %arg1: i32) -> (i32, i32) {
    %c0_i32 = arith.constant 0 : i32
    %c0_i32_0 = arith.constant 0 : i32
    %c0_i32_1 = arith.constant 0 : i32
    return %c0_i32, %c0_i32_0 : i32, i32
  }
  func.func @transform_4(%arg0: i32, %arg1: i32) -> (i32, i32) {
    %c0_i32 = arith.constant 0 : i32
    %c0_i32_0 = arith.constant 0 : i32
    return %arg0, %c0_i32 : i32, i32
  }
}

</mosaic_0001>

<bundles_post_ra>
// kernel: tpu_custom_call.1
= control target key start
LH: loop header
LB: loop body
LE: loop exit
PB: predicated region body
PF: predicated region fallthrough
CT: control target
= control target key end

     0   :  { %9 = vsyncpa [#allocation3], 0  ;;  %s376_s0 = inlined_call_operand.hbm [shape: f32[8,128], index: 0, kind: input, shape index: {}]   ;;  %s377_s1 = inlined_call_operand.hbm [shape: f32[8,128], index: 1, kind: input, shape index: {}]   ;;  %s378_s2 = inlined_call_operand.hbm [shape: f32[128,128], index: 2, kind: input, shape index: {}]   ;;  %s379_s3 = inlined_call_operand.vmem [shape: f32[1,128], index: 3, kind: input, shape index: {}]   ;;  %s380_s4 = inlined_call_operand.hbm [shape: f32[8,128], index: 4, kind: output, shape index: {}]  }
   0x1   :  { %10 = vsyncpa [#allocation6], 0 }
   0x2   :  { %11 = vsyncpa [#allocation4], 0  ;;  %s292_s15 = smov [#allocation5]   ;;  %s293_s17 = smov [#allocation2]  }
   0x3   :  { %s28_s16 = sshll.u32 %s292_s15, 4  ;;  %s18_s18 = sshll.u32 %s293_s17, 4  ;;  %s29_s16 = int_to_ptr.vmem [resolvable:$true] %s28_s16  ;;  %s19_s18 = int_to_ptr.vmem [resolvable:$true] %s18_s18 }
   0x4   :  { %s198_s21 = scalar_lea.hbm %s377_s1, 128 }
   0x5   :  { %p199_p0 = scmp.ne.s32.totalorder %s377_s1, %s198_s21  ;;  %p202_p1 = scmp.lt.u32.totalorder %s198_s21, %s377_s1 }
   0x7   :  { %p204_p2 = pnand %p202_p1, %p199_p0 }
   0x9   :  { %207 = shalt.err (!%p204_p2)
}
   0xa   :  { %s208_s26 = scalar_lea.vmem %s29_s16, 128  ;;  %p213_p4 = scmp.lt.s32.totalorder %s29_s16, %s29_s16 }
   0xb   :  { %p209_p3 = scmp.ne.s32.totalorder %s29_s16, %s208_s26  ;;  %p214_p5 = scmp.lt.s32.totalorder %s208_s26, %s208_s26 }
   0xd   :  { %p215_p6 = por %p214_p5, %p213_p4 }
   0xf   :  { %p216_p7 = pnand %p215_p6, %p209_p3 }
  0x11   :  { %219 = shalt.err (!%p216_p7)
}
  0x12   :  { %31 = dma.hbm_to_vmem [thread:$0]  %s377_s1, 128, %s29_s16, [#allocation6]  }
  0x13   :  { %s220_s5 = scalar_lea.hbm %s376_s0, 128 }
  0x14   :  { %p221_p8 = scmp.ne.s32.totalorder %s376_s0, %s220_s5  ;;  %p224_p9 = scmp.lt.u32.totalorder %s220_s5, %s376_s0 }
  0x16   :  { %p226_p10 = pnand %p224_p9, %p221_p8 }
  0x18   :  { %229 = shalt.err (!%p226_p10)
}
  0x19   :  { %s230_s10 = scalar_lea.vmem %s19_s18, 128  ;;  %p235_p12 = scmp.lt.s32.totalorder %s19_s18, %s19_s18 }
  0x1a   :  { %p231_p11 = scmp.ne.s32.totalorder %s19_s18, %s230_s10  ;;  %p236_p13 = scmp.lt.s32.totalorder %s230_s10, %s230_s10 }
  0x1c   :  { %p237_p0 = por %p236_p13, %p235_p12 }
  0x1e   :  { %p238_p1 = pnand %p237_p0, %p231_p11 }
  0x20   :  { %241 = shalt.err (!%p238_p1)
}
  0x21   :  { %21 = dma.hbm_to_vmem [thread:$0]  %s376_s0, 128, %s19_s18, [#allocation3]  }
  0x22   :  { %s294_s12 = smov [#allocation7]   ;;  %s242_s16 = scalar_lea.hbm %s378_s2, 2048 }
  0x23   :  { %s37_s13 = sshll.u32 %s294_s12, 4  ;;  %p243_p2 = scmp.ne.s32.totalorder %s378_s2, %s242_s16  ;;  %s38_s13 = int_to_ptr.vmem [resolvable:$true] %s37_s13 }
  0x24   :  { %p246_p3 = scmp.lt.u32.totalorder %s242_s16, %s378_s2 }
  0x26   :  { %p248_p4 = pnand %p246_p3, %p243_p2 }
  0x28   :  { %251 = shalt.err (!%p248_p4)
}
  0x29   :  { %s252_s22 = scalar_lea.vmem %s38_s13, 2048  ;;  %p257_p6 = scmp.lt.s32.totalorder %s38_s13, %s38_s13 }
  0x2a   :  { %p253_p5 = scmp.ne.s32.totalorder %s38_s13, %s252_s22  ;;  %p258_p7 = scmp.lt.s32.totalorder %s252_s22, %s252_s22 }
  0x2c   :  { %p259_p8 = por %p258_p7, %p257_p6 }
  0x2e   :  { %p260_p9 = pnand %p259_p8, %p253_p5 }
  0x30   :  { %263 = shalt.err (!%p260_p9)
}
  0x31   :  { %s295_s0 = smov 128   ;;  %s296_s18 = smov 8  }
  0x32   :  { %43 = dma.hbm_to_vmem [thread:$0]  %s378_s2, 2048, %s38_s13, [#allocation6], %s295_s0, %s295_s0, %s296_s18  }
  0x33   :  { %286 = dma.done.wait [#allocation3], 128  }
  0x34   :  { %287 = vsyncadd [#allocation3], 4294967168 }
  0x35   :  { %288 = dma.done.wait [#allocation6], 2176  }
  0x36   :  { %289 = vsyncadd [#allocation6], 4294965120  ;;  %v297_v0 = vmov 0.0   ;;  %vm298_vm0 = vmmov 0   ;;  %v76_v1 = vld [vmem:[#allocation7] sm:$0xff]  ;;  %v77_v2 = vld [vmem:[#allocation7 + $0x8] sm:$0xff] }
  0x37   :  { %168 = vmatprep.subr.bf16.mxu0 %v297_v0  ;;  %184 = vmatprep.mubr.msk.bf16.mxu0 %vm298_vm0, %v297_v0  ;;  %v78_v3 = vld [vmem:[#allocation7 + $0x10] sm:$0xff]  ;;  %v92_v4 = vpack.c.bf16 %v77_v2, %v76_v1  ;;  %v79_v5 = vld [vmem:[#allocation7 + $0x18] sm:$0xff]  ;;  %v80_v7 = vld [vmem:[#allocation7 + $0x20] sm:$0xff]  ;;  %s299_s26 = smov [#allocation8]  }
  0x38   :  { %v93_v6 = vpack.c.bf16 %v79_v5, %v78_v3  ;;  %v81_v8 = vld [vmem:[#allocation7 + $0x28] sm:$0xff]  ;;  %v69_v9 = vld [vmem:[#allocation5] sm:$0xff]  ;;  %v82_v12 = vld [vmem:[#allocation7 + $0x30] sm:$0xff]  ;;  %s148_s27 = sshll.u32 %s299_s26, 4  ;;  %s149_s27 = int_to_ptr.vmem [resolvable:$true] %s148_s27 }
  0x39   :  { %169 = vmatpush3.bf16.msra.mxu0 %v92_v4  ;;  %v70_v10 = vsub.f32 0.0, %v69_v9  ;;  %v94_v11 = vpack.c.bf16 %v81_v8, %v80_v7  ;;  %v83_v13 = vld [vmem:[#allocation7 + $0x38] sm:$0xff]  ;;  %v84_v16 = vld [vmem:[#allocation7 + $0x40] sm:$0xff]  ;;  %v85_v17 = vld [vmem:[#allocation7 + $0x48] sm:$0xff]  ;;  %s264_s28 = scalar_lea.vmem %s149_s27, 128  ;;  %p269_p11 = scmp.lt.s32.totalorder %s149_s27, %s149_s27 }
  0x3a   :  { %170 = vmatprep.subr.bf16.mxu0 %v297_v0  ;;  %v95_v15 = vpack.c.bf16 %v83_v13, %v82_v12  ;;  %v96_v18 = vpack.c.bf16 %v85_v17, %v84_v16  ;;  %v86_v19 = vld [vmem:[#allocation7 + $0x50] sm:$0xff]  ;;  %v87_v20 = vld [vmem:[#allocation7 + $0x58] sm:$0xff]  ;;  %v88_v22 = vld [vmem:[#allocation7 + $0x60] sm:$0xff]  ;;  %p265_p10 = scmp.ne.s32.totalorder %s149_s27, %s264_s28  ;;  %p270_p12 = scmp.lt.s32.totalorder %s264_s28, %s264_s28 }
  0x3b   :  { %v71_v14 = vmul.f32 1.442695, %v70_v10  ;;  %v97_v21 = vpack.c.bf16 %v87_v20, %v86_v19  ;;  %v89_v23 = vld [vmem:[#allocation7 + $0x68] sm:$0xff]  ;;  %v68_v26 = vld [vmem:[#allocation2] sm:$0xff]  ;;  %v91_v28 = vld [vmem:[#allocation7 + $0x78] sm:$0xff] }
  0x3c   :  { %v98_v25 = vpack.c.bf16 %v89_v23, %v88_v22  ;;  %v90_v27 = vld [vmem:[#allocation7 + $0x70] sm:$0xff]  ;;  %p271_p13 = por %p270_p12, %p269_p11 }
  0x3d   :  { %171 = vmatpush3.bf16.msra.mxu0 %v93_v6  ;;  %196 = vpow2.f32 %v71_v14  ;;  %v99_v30 = vpack.c.bf16 %v91_v28, %v90_v27  ;;  %v158_v32 = vld [vmem:[%s379_s3] ss:$0 sm:$0xff] }
  0x3e   :  { %172 = vmatprep.subr.bf16.mxu0 %v297_v0  ;;  %p272_p0 = pnand %p271_p13, %p265_p10 }
  0x41   :  { %173 = vmatpush3.bf16.msra.mxu0 %v94_v11 }
  0x42   :  { %174 = vmatprep.subr.bf16.mxu0 %v297_v0 }
  0x45   :  { %175 = vmatpush3.bf16.msra.mxu0 %v95_v15 }
  0x46   :  { %176 = vmatprep.subr.bf16.mxu0 %v297_v0 }
  0x47   :  { %v197_v24 = vpop.eup %196 }
  0x48   :  { %v73_v29 = vmul.f32 %v197_v24, %v68_v26 }
  0x49   :  { %177 = vmatpush3.bf16.msra.mxu0 %v96_v18 }
  0x4a   :  { %178 = vmatprep.subr.bf16.mxu0 %v297_v0  ;;  %v74_v31 = vpack.c.bf16 %v73_v29, %v73_v29 }
  0x4d   :  { %179 = vmatpush3.bf16.msra.mxu0 %v97_v21 }
  0x4e   :  { %180 = vmatprep.subr.bf16.mxu0 %v297_v0 }
  0x51   :  { %181 = vmatpush3.bf16.msra.mxu0 %v98_v25 }
  0x52   :  { %182 = vmatprep.subr.bf16.mxu0 %v297_v0 }
  0x55   :  { %183 = vmatpush3.bf16.msra.mxu0 %v99_v30 }
  0x58   :  { %185 = vmatmul.mubr.bf16.vlgmr.msra.gmra.mrb[0].mxu0 %v74_v31 }
 0x12b   :  { %v134_v33 = vpop.f32.mrb[0].mxu0 }
 0x12c   :  { %v140_v34 = vadd.f32 %v158_v32, %v134_v33  ;;  %v186_v35 = vpop.f32.mrb[1].mxu0 }
 0x12d   :  { %v137_v36 = vpop.f32.mrb[2].mxu0 }
 0x12e   :  { %141 = vst [vmem:[#allocation8] sm:$0xff] %v140_v34  ;;  %v187_v37 = vpop.f32.mrb[3].mxu0 }
 0x12f   :  { %275 = shalt.err (!%p272_p0)
}
 0x130   :  { %s276_s3 = scalar_lea.hbm %s380_s4, 128 }
 0x131   :  { %p277_p1 = scmp.ne.s32.totalorder %s380_s4, %s276_s3  ;;  %p280_p2 = scmp.lt.u32.totalorder %s276_s3, %s380_s4 }
 0x133   :  { %p282_p3 = pnand %p280_p2, %p277_p1 }
 0x135   :  { %285 = shalt.err (!%p282_p3)
}
 0x136   :  { %151 = dma.vmem_to_hbm [thread:$0]  %s149_s27, 128, %s380_s4, [#allocation4]  }
 0x137   :  { %290 = dma.done.wait [#allocation4], 128  }
 0x138   :  { %291 = vsyncadd [#allocation4], 4294967168 }
 0x139   :  { %155 = vsyncpa [#allocation3], 1 }
 0x13a   :  { %156 = vsyncpa [#allocation6], 1 }
 0x13b   :  { %157 = vsyncpa [#allocation4], 1 }

</bundles_post_ra>
